<compile_context>
chip_gen: v7x
topology: tpu7x:2x2x1
jax: 0.10.0
libtpu: 0.0.40
codegen_flags: <defaults>
</compile_context>

<pallas_src>
import jax
import jax.numpy as jnp
from jax import lax
from jax.experimental import pallas as pl
from jax.experimental.pallas import tpu as pltpu

W = 1024  # width implied by the final .view(-1, 1, 1024)


def _round_up(x, m):
    return ((x + m - 1) // m) * m


def _corner_kernel(w1_ref, w2_ref, x_ref, out_ref):
    # w1_ref : SMEM (18,)      conv1 weights, flat index o*9 + c*3 + k
    # w2_ref : SMEM (6,)       conv2 weights, flat index c*3 + k
    # x_ref  : VMEM (TB, 3*W)  batch-major slab; channels are contiguous W-chunks
    # out_ref: VMEM (TB, W)
    w = out_ref.shape[1]

    # Channel views: static, 128-aligned lane slices (W = 1024).
    xs = (x_ref[:, 0:w], x_ref[:, w:2 * w], x_ref[:, 2 * w:3 * w])

    # Edge masks at (1, W); jnp.where broadcasts them across sublanes.
    lane = lax.broadcasted_iota(jnp.int32, (1, w), 1)
    is_first = lane == 0          # lane 0   -> left zero-pad
    is_last = lane == (w - 1)     # lane W-1 -> right zero-pad

    def conv_k3(chs, wref, o_base):
        """1-D conv, kernel 3, zero pad, for one output channel.

        Weight-mix first (per-tap channel sums), then roll only the two
        shifted tap sums and fix the zero-padded edges once each.
        """
        n_in = len(chs)
        s0 = wref[o_base + 0] * chs[0]   # tap k=0 -> multiplies x[j-1]
        s1 = wref[o_base + 1] * chs[0]   # tap k=1 -> multiplies x[j]
        s2 = wref[o_base + 2] * chs[0]   # tap k=2 -> multiplies x[j+1]
        for c in range(1, n_in):
            s0 = s0 + wref[o_base + 3 * c + 0] * chs[c]
            s1 = s1 + wref[o_base + 3 * c + 1] * chs[c]
            s2 = s2 + wref[o_base + 3 * c + 2] * chs[c]
        prev = jnp.where(is_first, 0.0, pltpu.roll(s0, shift=1, axis=1))
        nxt = jnp.where(is_last, 0.0, pltpu.roll(s2, shift=w - 1, axis=1))
        return prev + s1 + nxt

    # ---- conv1 (3 -> 2 channels) + LeakyReLU(0.2) ----
    h = []
    for o in range(2):
        acc = conv_k3(xs, w1_ref, o * 9)
        h.append(jnp.maximum(acc, 0.2 * acc))    # LeakyReLU, slope 0.2 > 0

    # ---- conv2 (2 -> 1 channel) + sigmoid ----
    out = jax.nn.sigmoid(conv_k3(tuple(h), w2_ref, 0))   # exp/recip -> EUP slot
    out_ref[...] = out.astype(out_ref.dtype)


def corner_forward(horizon_output, w1, w2, *, tb=None):
    """horizon_output: (B, ...) with 3*W elements per batch item,
    w1: (2,3,3) f32, w2: (1,2,3) f32. Returns (B, 1, 1024)."""
    b = horizon_output.shape[0]
    # Free reshape of the contiguous (B, 3, W) view -- no transpose, no extra
    # HBM round trip before the kernel.
    x = horizon_output.reshape(b, 3 * W).astype(jnp.float32)
    w1f = jnp.asarray(w1, jnp.float32).reshape(-1)   # (18,)
    w2f = jnp.asarray(w2, jnp.float32).reshape(-1)   # (6,)

    if tb is None:
        if b <= 8:
            # Tiny batch: single 8-row block (one grid step).
            # TODO(synk): for v7x megacore at B<=8, split W with a 1-lane halo.
            tb = 8
        else:
            tb = min(256, _round_up(-(-b // 2), 8))
            steps = -(-b // tb)
            if steps > 1 and steps % 2 == 1:
                # Even step count so both v7x TensorCores get equal work.
                tb = min(256, _round_up(-(-b // (steps + 1)), 8))
    bp = _round_up(b, tb)
    if bp != b:
        x = jnp.pad(x, ((0, bp - b), (0, 0)))

    out = pl.pallas_call(
        _corner_kernel,
        out_shape=jax.ShapeDtypeStruct((bp, W), jnp.float32),
        grid_spec=pltpu.PrefetchScalarGridSpec(
            num_scalar_prefetch=0,
            grid=(bp // tb,),
            in_specs=[
                pl.BlockSpec(memory_space=pltpu.MemorySpace.SMEM),   # w1 (18,)
                pl.BlockSpec(memory_space=pltpu.MemorySpace.SMEM),   # w2 (6,)
                pl.BlockSpec((tb, 3 * W), lambda i: (i, 0)),         # x
            ],
            out_specs=pl.BlockSpec((tb, W), lambda i: (i, 0)),
        ),
        compiler_params=pltpu.CompilerParams(
            dimension_semantics=("parallel",),
            # Covers v5e's 16 MiB scoped default at tb=256; safely below
            # v7x's 64 MiB physical VMEM.
            vmem_limit_bytes=48 * 1024 * 1024),
    )(w1f, w2f, x)

    return out[:b].reshape(-1, 1, 1024)


def _reference(horizon_output, w1, w2):
    """Pure-JAX reference with identical semantics (for validation)."""
    b = horizon_output.shape[0]
    x = horizon_output.reshape(b, 3, W).astype(jnp.float32)

    def conv1d_k3(x, w):  # x: (B, Cin, W), w: (Cout, Cin, 3), pad=1
        xp = jnp.pad(x, ((0, 0), (0, 0), (1, 1)))
        out = jnp.zeros((x.shape[0], w.shape[0], x.shape[2]), jnp.float32)
        for k in range(3):
            out = out + jnp.einsum('bcw,oc->bow',
                                   xp[:, :, k:k + x.shape[2]], w[:, :, k])
        return out

    h = conv1d_k3(x, w1)
    h = jnp.where(h >= 0, h, 0.2 * h)
    o = jax.nn.sigmoid(conv1d_k3(h, w2))
    return o.reshape(-1, 1, 1024)


if __name__ == "__main__":
    key = jax.random.PRNGKey(0)
    k_x, k_w1, k_w2 = jax.random.split(key, 3)

    batch = 2
    # Input equivalent to the PyTorch horizon_output before .view(B, 3, 1, -1).
    horizon_output = jax.random.normal(k_x, (batch, 3, W), dtype=jnp.float32)

    # Deterministic weight init (synthetic N(0, 0.02), not a checkpoint load).
    w1 = (0.02 * jax.random.normal(k_w1, (2, 3, 3))).astype(jnp.float32)
    w2 = (0.02 * jax.random.normal(k_w2, (1, 2, 3))).astype(jnp.float32)

    out = corner_forward(horizon_output, w1, w2)
    out = jax.block_until_ready(out)

    ref = _reference(horizon_output, w1, w2)
    assert out.shape == (batch, 1, 1024), out.shape
    assert jnp.allclose(out, ref, atol=1e-5, rtol=1e-5), \
        float(jnp.max(jnp.abs(out - ref)))

    print("KERNEL_OK")
</pallas_src>

<mosaic_0001>
module attributes {stable_mosaic.version = 11 : i64} {
  func.func @_corner_kernel(%arg0: i32, %arg1: memref<18xf32, #tpu.memory_space<smem>>, %arg2: memref<6xf32, #tpu.memory_space<smem>>, %arg3: memref<8x3072xf32, #tpu.memory_space<vmem>>, %arg4: memref<8x1024xf32, #tpu.memory_space<vmem>>) attributes {dimension_semantics = [#tpu.dimension_semantics<parallel>], iteration_bounds = array<i64: 1>, scalar_prefetch = 0 : i64, scratch_operands = 0 : i64, tpu.core_type = #tpu.core_type<tc>, window_params = [{transform_indices = @transform_0, window_bounds = array<i64: 18>}, {transform_indices = @transform_1, window_bounds = array<i64: 6>}, {transform_indices = @transform_2, window_bounds = array<i64: 8, 3072>}, {transform_indices = @transform_3, window_bounds = array<i64: 8, 1024>}]} {
    %c0 = arith.constant 0 : index
    %c0_0 = arith.constant 0 : index
    %0 = vector.load %arg3[%c0, %c0_0] : memref<8x3072xf32, #tpu.memory_space<vmem>>, vector<8x1024xf32>
    %c0_1 = arith.constant 0 : index
    %c1024 = arith.constant 1024 : index
    %1 = vector.load %arg3[%c0_1, %c1024] : memref<8x3072xf32, #tpu.memory_space<vmem>>, vector<8x1024xf32>
    %c0_2 = arith.constant 0 : index
    %c2048 = arith.constant 2048 : index
    %2 = vector.load %arg3[%c0_2, %c2048] : memref<8x3072xf32, #tpu.memory_space<vmem>>, vector<8x1024xf32>
    %3 = tpu.iota {dimensions = array<i32: 1>} : vector<1x1024xi32>
    %c0_i32 = arith.constant 0 : i32
    %4 = vector.broadcast %c0_i32 : i32 to vector<1x1024xi32>
    %5 = arith.cmpi eq, %3, %4 : vector<1x1024xi32>
    %c1023_i32 = arith.constant 1023 : i32
    %6 = vector.broadcast %c1023_i32 : i32 to vector<1x1024xi32>
    %7 = arith.cmpi eq, %3, %6 : vector<1x1024xi32>
    %c0_3 = arith.constant 0 : index
    %8 = memref.load %arg1[%c0_3] : memref<18xf32, #tpu.memory_space<smem>>
    %9 = vector.broadcast %8 : f32 to vector<8x1024xf32>
    %10 = arith.mulf %9, %0 : vector<8x1024xf32>
    %c1 = arith.constant 1 : index
    %11 = memref.load %arg1[%c1] : memref<18xf32, #tpu.memory_space<smem>>
    %12 = vector.broadcast %11 : f32 to vector<8x1024xf32>
    %13 = arith.mulf %12, %0 : vector<8x1024xf32>
    %c2 = arith.constant 2 : index
    %14 = memref.load %arg1[%c2] : memref<18xf32, #tpu.memory_space<smem>>
    %15 = vector.broadcast %14 : f32 to vector<8x1024xf32>
    %16 = arith.mulf %15, %0 : vector<8x1024xf32>
    %c3 = arith.constant 3 : index
    %17 = memref.load %arg1[%c3] : memref<18xf32, #tpu.memory_space<smem>>
    %18 = vector.broadcast %17 : f32 to vector<8x1024xf32>
    %19 = arith.mulf %18, %1 : vector<8x1024xf32>
    %20 = arith.addf %10, %19 : vector<8x1024xf32>
    %c4 = arith.constant 4 : index
    %21 = memref.load %arg1[%c4] : memref<18xf32, #tpu.memory_space<smem>>
    %22 = vector.broadcast %21 : f32 to vector<8x1024xf32>
    %23 = arith.mulf %22, %1 : vector<8x1024xf32>
    %24 = arith.addf %13, %23 : vector<8x1024xf32>
    %c5 = arith.constant 5 : index
    %25 = memref.load %arg1[%c5] : memref<18xf32, #tpu.memory_space<smem>>
    %26 = vector.broadcast %25 : f32 to vector<8x1024xf32>
    %27 = arith.mulf %26, %1 : vector<8x1024xf32>
    %28 = arith.addf %16, %27 : vector<8x1024xf32>
    %c6 = arith.constant 6 : index
    %29 = memref.load %arg1[%c6] : memref<18xf32, #tpu.memory_space<smem>>
    %30 = vector.broadcast %29 : f32 to vector<8x1024xf32>
    %31 = arith.mulf %30, %2 : vector<8x1024xf32>
    %32 = arith.addf %20, %31 : vector<8x1024xf32>
    %c7 = arith.constant 7 : index
    %33 = memref.load %arg1[%c7] : memref<18xf32, #tpu.memory_space<smem>>
    %34 = vector.broadcast %33 : f32 to vector<8x1024xf32>
    %35 = arith.mulf %34, %2 : vector<8x1024xf32>
    %36 = arith.addf %24, %35 : vector<8x1024xf32>
    %c8 = arith.constant 8 : index
    %37 = memref.load %arg1[%c8] : memref<18xf32, #tpu.memory_space<smem>>
    %38 = vector.broadcast %37 : f32 to vector<8x1024xf32>
    %39 = arith.mulf %38, %2 : vector<8x1024xf32>
    %40 = arith.addf %28, %39 : vector<8x1024xf32>
    %c1_i32 = arith.constant 1 : i32
    %41 = tpu.dynamic_rotate %32 by %c1_i32 dim 1 : vector<8x1024xf32>, i32 -> vector<8x1024xf32>
    %cst = arith.constant 0.000000e+00 : f32
    %42 = vector.shape_cast %5 : vector<1x1024xi1> to vector<1x1024xi1>
    %43 = vector.broadcast %42 : vector<1x1024xi1> to vector<8x1024xi1>
    %44 = vector.broadcast %cst : f32 to vector<8x1024xf32>
    %45 = arith.select %43, %44, %41 : vector<8x1024xi1>, vector<8x1024xf32>
    %c1023_i32_4 = arith.constant 1023 : i32
    %46 = tpu.dynamic_rotate %40 by %c1023_i32_4 dim 1 : vector<8x1024xf32>, i32 -> vector<8x1024xf32>
    %cst_5 = arith.constant 0.000000e+00 : f32
    %47 = vector.shape_cast %7 : vector<1x1024xi1> to vector<1x1024xi1>
    %48 = vector.broadcast %47 : vector<1x1024xi1> to vector<8x1024xi1>
    %49 = vector.broadcast %cst_5 : f32 to vector<8x1024xf32>
    %50 = arith.select %48, %49, %46 : vector<8x1024xi1>, vector<8x1024xf32>
    %51 = arith.addf %45, %36 : vector<8x1024xf32>
    %52 = arith.addf %51, %50 : vector<8x1024xf32>
    %cst_6 = arith.constant 2.000000e-01 : f32
    %53 = vector.broadcast %cst_6 : f32 to vector<8x1024xf32>
    %54 = arith.mulf %53, %52 : vector<8x1024xf32>
    %55 = arith.maximumf %52, %54 : vector<8x1024xf32>
    %c9 = arith.constant 9 : index
    %56 = memref.load %arg1[%c9] : memref<18xf32, #tpu.memory_space<smem>>
    %57 = vector.broadcast %56 : f32 to vector<8x1024xf32>
    %58 = arith.mulf %57, %0 : vector<8x1024xf32>
    %c10 = arith.constant 10 : index
    %59 = memref.load %arg1[%c10] : memref<18xf32, #tpu.memory_space<smem>>
    %60 = vector.broadcast %59 : f32 to vector<8x1024xf32>
    %61 = arith.mulf %60, %0 : vector<8x1024xf32>
    %c11 = arith.constant 11 : index
    %62 = memref.load %arg1[%c11] : memref<18xf32, #tpu.memory_space<smem>>
    %63 = vector.broadcast %62 : f32 to vector<8x1024xf32>
    %64 = arith.mulf %63, %0 : vector<8x1024xf32>
    %c12 = arith.constant 12 : index
    %65 = memref.load %arg1[%c12] : memref<18xf32, #tpu.memory_space<smem>>
    %66 = vector.broadcast %65 : f32 to vector<8x1024xf32>
    %67 = arith.mulf %66, %1 : vector<8x1024xf32>
    %68 = arith.addf %58, %67 : vector<8x1024xf32>
    %c13 = arith.constant 13 : index
    %69 = memref.load %arg1[%c13] : memref<18xf32, #tpu.memory_space<smem>>
    %70 = vector.broadcast %69 : f32 to vector<8x1024xf32>
    %71 = arith.mulf %70, %1 : vector<8x1024xf32>
    %72 = arith.addf %61, %71 : vector<8x1024xf32>
    %c14 = arith.constant 14 : index
    %73 = memref.load %arg1[%c14] : memref<18xf32, #tpu.memory_space<smem>>
    %74 = vector.broadcast %73 : f32 to vector<8x1024xf32>
    %75 = arith.mulf %74, %1 : vector<8x1024xf32>
    %76 = arith.addf %64, %75 : vector<8x1024xf32>
    %c15 = arith.constant 15 : index
    %77 = memref.load %arg1[%c15] : memref<18xf32, #tpu.memory_space<smem>>
    %78 = vector.broadcast %77 : f32 to vector<8x1024xf32>
    %79 = arith.mulf %78, %2 : vector<8x1024xf32>
    %80 = arith.addf %68, %79 : vector<8x1024xf32>
    %c16 = arith.constant 16 : index
    %81 = memref.load %arg1[%c16] : memref<18xf32, #tpu.memory_space<smem>>
    %82 = vector.broadcast %81 : f32 to vector<8x1024xf32>
    %83 = arith.mulf %82, %2 : vector<8x1024xf32>
    %84 = arith.addf %72, %83 : vector<8x1024xf32>
    %c17 = arith.constant 17 : index
    %85 = memref.load %arg1[%c17] : memref<18xf32, #tpu.memory_space<smem>>
    %86 = vector.broadcast %85 : f32 to vector<8x1024xf32>
    %87 = arith.mulf %86, %2 : vector<8x1024xf32>
    %88 = arith.addf %76, %87 : vector<8x1024xf32>
    %c1_i32_7 = arith.constant 1 : i32
    %89 = tpu.dynamic_rotate %80 by %c1_i32_7 dim 1 : vector<8x1024xf32>, i32 -> vector<8x1024xf32>
    %cst_8 = arith.constant 0.000000e+00 : f32
    %90 = vector.shape_cast %5 : vector<1x1024xi1> to vector<1x1024xi1>
    %91 = vector.broadcast %90 : vector<1x1024xi1> to vector<8x1024xi1>
    %92 = vector.broadcast %cst_8 : f32 to vector<8x1024xf32>
    %93 = arith.select %91, %92, %89 : vector<8x1024xi1>, vector<8x1024xf32>
    %c1023_i32_9 = arith.constant 1023 : i32
    %94 = tpu.dynamic_rotate %88 by %c1023_i32_9 dim 1 : vector<8x1024xf32>, i32 -> vector<8x1024xf32>
    %cst_10 = arith.constant 0.000000e+00 : f32
    %95 = vector.shape_cast %7 : vector<1x1024xi1> to vector<1x1024xi1>
    %96 = vector.broadcast %95 : vector<1x1024xi1> to vector<8x1024xi1>
    %97 = vector.broadcast %cst_10 : f32 to vector<8x1024xf32>
    %98 = arith.select %96, %97, %94 : vector<8x1024xi1>, vector<8x1024xf32>
    %99 = arith.addf %93, %84 : vector<8x1024xf32>
    %100 = arith.addf %99, %98 : vector<8x1024xf32>
    %cst_11 = arith.constant 2.000000e-01 : f32
    %101 = vector.broadcast %cst_11 : f32 to vector<8x1024xf32>
    %102 = arith.mulf %101, %100 : vector<8x1024xf32>
    %103 = arith.maximumf %100, %102 : vector<8x1024xf32>
    %c0_12 = arith.constant 0 : index
    %104 = memref.load %arg2[%c0_12] : memref<6xf32, #tpu.memory_space<smem>>
    %105 = vector.broadcast %104 : f32 to vector<8x1024xf32>
    %106 = arith.mulf %105, %55 : vector<8x1024xf32>
    %c1_13 = arith.constant 1 : index
    %107 = memref.load %arg2[%c1_13] : memref<6xf32, #tpu.memory_space<smem>>
    %108 = vector.broadcast %107 : f32 to vector<8x1024xf32>
    %109 = arith.mulf %108, %55 : vector<8x1024xf32>
    %c2_14 = arith.constant 2 : index
    %110 = memref.load %arg2[%c2_14] : memref<6xf32, #tpu.memory_space<smem>>
    %111 = vector.broadcast %110 : f32 to vector<8x1024xf32>
    %112 = arith.mulf %111, %55 : vector<8x1024xf32>
    %c3_15 = arith.constant 3 : index
    %113 = memref.load %arg2[%c3_15] : memref<6xf32, #tpu.memory_space<smem>>
    %114 = vector.broadcast %113 : f32 to vector<8x1024xf32>
    %115 = arith.mulf %114, %103 : vector<8x1024xf32>
    %116 = arith.addf %106, %115 : vector<8x1024xf32>
    %c4_16 = arith.constant 4 : index
    %117 = memref.load %arg2[%c4_16] : memref<6xf32, #tpu.memory_space<smem>>
    %118 = vector.broadcast %117 : f32 to vector<8x1024xf32>
    %119 = arith.mulf %118, %103 : vector<8x1024xf32>
    %120 = arith.addf %109, %119 : vector<8x1024xf32>
    %c5_17 = arith.constant 5 : index
    %121 = memref.load %arg2[%c5_17] : memref<6xf32, #tpu.memory_space<smem>>
    %122 = vector.broadcast %121 : f32 to vector<8x1024xf32>
    %123 = arith.mulf %122, %103 : vector<8x1024xf32>
    %124 = arith.addf %112, %123 : vector<8x1024xf32>
    %c1_i32_18 = arith.constant 1 : i32
    %125 = tpu.dynamic_rotate %116 by %c1_i32_18 dim 1 : vector<8x1024xf32>, i32 -> vector<8x1024xf32>
    %cst_19 = arith.constant 0.000000e+00 : f32
    %126 = vector.shape_cast %5 : vector<1x1024xi1> to vector<1x1024xi1>
    %127 = vector.broadcast %126 : vector<1x1024xi1> to vector<8x1024xi1>
    %128 = vector.broadcast %cst_19 : f32 to vector<8x1024xf32>
    %129 = arith.select %127, %128, %125 : vector<8x1024xi1>, vector<8x1024xf32>
    %c1023_i32_20 = arith.constant 1023 : i32
    %130 = tpu.dynamic_rotate %124 by %c1023_i32_20 dim 1 : vector<8x1024xf32>, i32 -> vector<8x1024xf32>
    %cst_21 = arith.constant 0.000000e+00 : f32
    %131 = vector.shape_cast %7 : vector<1x1024xi1> to vector<1x1024xi1>
    %132 = vector.broadcast %131 : vector<1x1024xi1> to vector<8x1024xi1>
    %133 = vector.broadcast %cst_21 : f32 to vector<8x1024xf32>
    %134 = arith.select %132, %133, %130 : vector<8x1024xi1>, vector<8x1024xf32>
    %135 = arith.addf %129, %120 : vector<8x1024xf32>
    %136 = arith.addf %135, %134 : vector<8x1024xf32>
    %137 = arith.negf %136 : vector<8x1024xf32>
    %138 = math.exp %137 : vector<8x1024xf32>
    %cst_22 = arith.constant 1.000000e+00 : f32
    %139 = vector.broadcast %cst_22 : f32 to vector<8x1024xf32>
    %140 = arith.addf %139, %138 : vector<8x1024xf32>
    %141 = arith.divf %139, %140 : vector<8x1024xf32>
    %c0_23 = arith.constant 0 : index
    %c0_24 = arith.constant 0 : index
    %142 = vector.load %arg4[%c0_23, %c0_24] : memref<8x1024xf32, #tpu.memory_space<vmem>>, vector<8x1024xf32>
    tpu.vector_store %arg4[%c0_23, %c0_24], %141 {strides = array<i32>} : memref<8x1024xf32, #tpu.memory_space<vmem>>, vector<8x1024xf32>,
    return
  }
  func.func @transform_0(%arg0: i32) -> i32 {
    %c0_i32 = arith.constant 0 : i32
    %c0_i32_0 = arith.constant 0 : i32
    return %c0_i32 : i32
  }
  func.func @transform_1(%arg0: i32) -> i32 {
    %c0_i32 = arith.constant 0 : i32
    %c0_i32_0 = arith.constant 0 : i32
    return %c0_i32 : i32
  }
  func.func @transform_2(%arg0: i32) -> (i32, i32) {
    %c0_i32 = arith.constant 0 : i32
    %c0_i32_0 = arith.constant 0 : i32
    return %arg0, %c0_i32 : i32, i32
  }
  func.func @transform_3(%arg0: i32) -> (i32, i32) {
    %c0_i32 = arith.constant 0 : i32
    %c0_i32_0 = arith.constant 0 : i32
    return %arg0, %c0_i32 : i32, i32
  }
}

</mosaic_0001>

<bundles_post_ra>
// kernel: tpu_custom_call.1
= control target key start
LH: loop header
LB: loop body
LE: loop exit
PB: predicated region body
PF: predicated region fallthrough
CT: control target
= control target key end

     0   :  { %8 = vsyncpa [#allocation5], 0  ;;  %s1816_s0 = inlined_call_operand.hbm [shape: f32[18], index: 0, kind: input, shape index: {}]   ;;  %s1817_s1 = inlined_call_operand.vmem [shape: f32[6], index: 1, kind: input, shape index: {}]   ;;  %s1818_s2 = inlined_call_operand.hbm [shape: f32[8,3072], index: 2, kind: input, shape index: {}]   ;;  %s1819_s3 = inlined_call_operand.hbm [shape: f32[8,1024], index: 3, kind: output, shape index: {}]  }
   0x1   :  { %9 = vsyncpa [#allocation6], 0 }
   0x2   :  { %10 = vsyncpa [#allocation3], 0 }
   0x3   :  { %11 = vsyncpa [#allocation4], 0  ;;  %s26_s14 = sshll.u32 %s1817_s1, 4  ;;  %s906_s17 = scalar_lea.hbm %s1816_s0, 16  ;;  %s27_s14 = int_to_ptr.vmem [resolvable:$true] %s26_s14 }
   0x4   :  { %p907_p0 = scmp.ne.s32.totalorder %s1816_s0, %s906_s17  ;;  %p910_p1 = scmp.lt.u32.totalorder %s906_s17, %s1816_s0 }
   0x6   :  { %p912_p2 = pnand %p910_p1, %p907_p0 }
   0x8   :  { %915 = shalt.err (!%p912_p2)
}
   0x9   :  { %s980_s22 = smov [#allocation2]   ;;  %s916_s1 = scalar_lea.vmem %s27_s14, 16 }
   0xa   :  { %19 = dma.hbm_to_smem %s1816_s0, 16, %s980_s22, [#allocation5]  }
   0xb   :  { %p917_p3 = scmp.ne.s32.totalorder %s27_s14, %s916_s1  ;;  %p921_p4 = scmp.lt.s32.totalorder %s27_s14, %s27_s14 }
   0xc   :  { %p922_p5 = scmp.lt.s32.totalorder %s916_s1, %s916_s1 }
   0xe   :  { %p923_p6 = por %p922_p5, %p921_p4 }
  0x10   :  { %p924_p7 = pnand %p923_p6, %p917_p3 }
  0x12   :  { %927 = shalt.err (!%p924_p7)
}
  0x13   :  { %s981_s25 = smov [#allocation7]   ;;  %s982_s26 = smov [#allocation8]  }
  0x14   :  { %29 = dma.vmem_to_smem %s27_s14, 16, %s981_s25, [#allocation6]  }
  0x15   :  { %s36_s27 = sshll.u32 %s982_s26, 4  ;;  %s928_s30 = scalar_lea.hbm %s1818_s2, 3072  ;;  %s37_s27 = int_to_ptr.vmem [resolvable:$true] %s36_s27 }
  0x16   :  { %p929_p8 = scmp.ne.s32.totalorder %s1818_s2, %s928_s30  ;;  %p932_p9 = scmp.lt.u32.totalorder %s928_s30, %s1818_s2 }
  0x18   :  { %p934_p10 = pnand %p932_p9, %p929_p8 }
  0x1a   :  { %937 = shalt.err (!%p934_p10)
}
  0x1b   :  { %s938_s7 = scalar_lea.vmem %s37_s27, 3072  ;;  %p943_p12 = scmp.lt.s32.totalorder %s37_s27, %s37_s27 }
  0x1c   :  { %p939_p11 = scmp.ne.s32.totalorder %s37_s27, %s938_s7  ;;  %p944_p13 = scmp.lt.s32.totalorder %s938_s7, %s938_s7 }
  0x1e   :  { %p945_p0 = por %p944_p13, %p943_p12 }
  0x20   :  { %p946_p1 = pnand %p945_p0, %p939_p11 }
  0x22   :  { %949 = shalt.err (!%p946_p1)
}
  0x23   :  { %39 = dma.hbm_to_vmem [thread:$0]  %s1818_s2, 3072, %s37_s27, [#allocation3]  }
  0x24   :  { %972 = dma.done.wait [#allocation5], 16  }
  0x25   :  { %973 = vsyncadd [#allocation5], 4294967280 }
  0x26   :  { %974 = dma.done.wait [#allocation6], 16  }
  0x27   :  { %975 = vsyncadd [#allocation6], 4294967280 }
  0x28   :  { %976 = dma.done.wait [#allocation3], 3072  }
  0x29   :  { %977 = vsyncadd [#allocation3], 4294964224 }
  0x2a   :  { %49 = sfence }
  0x2b   :  { %s846_s10 = sld [smem:[#allocation2 + $0x9]]  ;;  %s849_s11 = sld [smem:[#allocation2 + $0xc]]  ;;  %v1033_v0 = vld [vmem:[#allocation8] sm:$0xff]  ;;  %v1035_v1 = vld [vmem:[#allocation8 + $0x38] sm:$0xff]  ;;  %v1071_v19 = vld [vmem:[#allocation8 + $0x30] sm:$0xff] }
  0x2c   :  { %s852_s12 = sld [smem:[#allocation2 + $0xf]]  ;;  %s99_s13 = sld [smem:[#allocation2]]  ;;  %v1037_v2 = vld [vmem:[#allocation8 + $0x40] sm:$0xff]  ;;  %v1043_v5 = vld [vmem:[#allocation8 + $0x78] sm:$0xff]  ;;  %v1073_v20 = vld [vmem:[#allocation8 + $0x70] sm:$0xff] }
  0x2d   :  { %s840_s14 = sld [smem:[#allocation2 + $0x3]]  ;;  %s843_s15 = sld [smem:[#allocation2 + $0x6]]  ;;  %v1039_v3 = vld [vmem:[#allocation8 + $0x80] sm:$0xff]  ;;  %v1051_v9 = vld [vmem:[#allocation8 + $0xb8] sm:$0xff]  ;;  %v1081_v25 = vld [vmem:[#allocation8 + $0xb0] sm:$0xff] }
  0x2e   :  { %v1087_v30 = vld [vmem:[#allocation8 + $0x10] sm:$0xff]  ;;  %s1089_s2 = sld [smem:[#allocation2 + $0x2]]  ;;  %v1097_v35 = vld [vmem:[#allocation8 + $0x8] sm:$0xff]  ;;  %s1099_s16 = sld [smem:[#allocation2 + $0x5]]  ;;  %v1116_v46 = vld [vmem:[#allocation8 + $0x20] sm:$0xff] }
  0x2f   :  { %v1095_v34 = vld [vmem:[#allocation8 + $0x50] sm:$0xff]  ;;  %v1107_v41 = vld [vmem:[#allocation8 + $0x48] sm:$0xff]  ;;  %s1109_s17 = sld [smem:[#allocation2 + $0x8]]  ;;  %s983_s18 = smov 1   ;;  %v1118_v47 = vld [vmem:[#allocation8 + $0x60] sm:$0xff] }
  0x30   :  { %v1105_v40 = vld [vmem:[#allocation8 + $0x90] sm:$0xff]  ;;  %v1125_v51 = vld [vmem:[#allocation8 + $0x88] sm:$0xff]  ;;  %v1129_v53 = vld [vmem:[#allocation8 + $0x18] sm:$0xff]  ;;  %s1181_s19 = sld [smem:[#allocation2 + $0xb]]  ;;  %s1183_s20 = sld [smem:[#allocation2 + $0xe]] }
  0x31   :  { %v1041_v4 = vstv %s846_s10  ;;  %v1047_v7 = vstv %s849_s11  ;;  %v1131_v54 = vld [vmem:[#allocation8 + $0x58] sm:$0xff]  ;;  %v1137_v60 = vld [vmem:[#allocation8 + $0xa0] sm:$0xff]  ;;  %s1198_s21 = sld [smem:[#allocation2 + $0x11]]  ;;  %s984_s22 = smov 127  }
  0x32   :  { %v369_v6 = vmul.f32 %v1041_v4, %v1033_v0  ;;  %v1049_v8 = vstv %s852_s12  ;;  %v376_v10 = vmul.f32 %v1041_v4, %v1035_v1  ;;  %v399_v11 = vmul.f32 %v1047_v7, %v1037_v2  ;;  %s1297_s23 = sld [smem:[#allocation2 + $0xa]]  ;;  %s1308_s24 = sld [smem:[#allocation2 + $0xd]] }
  0x33   :  { %v453_v12 = vmul.f32 %v1049_v8, %v1039_v3  ;;  %v1059_v13 = vstv %s99_s13  ;;  %v1061_v14 = vstv %s840_s14  ;;  %v1067_v17 = vstv %s843_s15  ;;  %s1310_s1 = sld [smem:[#allocation2 + $0x10]]  ;;  %s1317_s25 = sld [smem:[#allocation2 + $0x1]] }
  0x34   :  { %v101_v15 = vmul.f32 %v1059_v13, %v1033_v0  ;;  %v131_v16 = vmul.f32 %v1061_v14, %v1037_v2  ;;  %v406_v18 = vmul.f32 %v1047_v7, %v1043_v5  ;;  %v407_v21 = vadd.f32 %v399_v11, %v369_v6  ;;  %s1323_s26 = sld [smem:[#allocation2 + $0x4]]  ;;  %s1325_s27 = sld [smem:[#allocation2 + $0x7]] }
  0x35   :  { %v185_v22 = vmul.f32 %v1067_v17, %v1039_v3  ;;  %v460_v23 = vmul.f32 %v1049_v8, %v1051_v9  ;;  %v108_v24 = vmul.f32 %v1059_v13, %v1035_v1  ;;  %v138_v28 = vmul.f32 %v1061_v14, %v1043_v5  ;;  %s601_s28 = sld [smem:[#allocation7]]  ;;  %s856_s29 = sld [smem:[#allocation7 + $0x2]] }
  0x36   :  { %v139_v26 = vadd.f32 %v131_v16, %v101_v15  ;;  %v414_v27 = vadd.f32 %v406_v18, %v376_v10  ;;  %v192_v29 = vmul.f32 %v1067_v17, %v1051_v9  ;;  %v461_v31 = vadd.f32 %v453_v12, %v407_v21  ;;  %v1150_v12 = vld [vmem:[#allocation8 + $0x28] sm:$0xff]  ;;  %v1153_v16 = vld [vmem:[#allocation8 + $0x98] sm:$0xff]  ;;  %s857_s30 = sld [smem:[#allocation7 + $0x3]]  ;;  %s859_s4 = sld [smem:[#allocation7 + $0x5]] }
  0x37   :  { %v375_v32 = vmul.f32 %v1041_v4, %v1071_v19  ;;  %v405_v33 = vmul.f32 %v1047_v7, %v1073_v20  ;;  %v146_v37 = vadd.f32 %v138_v28, %v108_v24  ;;  %v459_v38 = vmul.f32 %v1049_v8, %v1081_v25  ;;  %v1158_v21 = vld [vmem:[#allocation8 + $0x68] sm:$0xff]  ;;  %s855_s5 = sld [smem:[#allocation7 + $0x1]]  ;;  %s858_s0 = sld [smem:[#allocation7 + $0x4]] }
  0x38   :  { %v193_v36 = vadd.f32 %v185_v22, %v139_v26  ;;  %v107_v39 = vmul.f32 %v1059_v13, %v1071_v19  ;;  %505 = vrot.lane.b32.xlu1 %v461_v31, %s983_s18  ;;  %v468_v42 = vadd.f32 %v460_v23, %v414_v27  ;;  %v137_v44 = vmul.f32 %v1061_v14, %v1073_v20  ;;  %v1172_v31 = vld [vmem:[#allocation8 + $0xa8] sm:$0xff]  ;;  %s985_s6 = smov [#allocation9]  }
  0x39   :  { %v413_v43 = vadd.f32 %v405_v33, %v375_v32  ;;  %v103_v45 = vmul.f32 %v1059_v13, %v1087_v30  ;;  %v200_v48 = vadd.f32 %v192_v29, %v146_v37  ;;  %v191_v49 = vmul.f32 %v1067_v17, %v1081_v25  ;;  %s827_s7 = sshll.u32 %s985_s6, 4  ;;  %s828_s7 = int_to_ptr.vmem [resolvable:$true] %s827_s7 }
  0x3a   :  { %237 = vrot.lane.b32.xlu0 %v193_v36, %s983_s18  ;;  %v133_v50 = vmul.f32 %v1061_v14, %v1095_v34  ;;  %v102_v52 = vmul.f32 %v1059_v13, %v1097_v35  ;;  %v145_v55 = vadd.f32 %v137_v44, %v107_v39  ;;  %v187_v56 = vmul.f32 %v1067_v17, %v1105_v40  ;;  %s950_s8 = scalar_lea.vmem %s828_s7, 1024  ;;  %p955_p3 = scmp.lt.s32.totalorder %s828_s7, %s828_s7 }
  0x3b   :  { %v132_v57 = vmul.f32 %v1061_v14, %v1107_v41  ;;  %v467_v58 = vadd.f32 %v459_v38, %v413_v43  ;;  %v105_v61 = vmul.f32 %v1059_v13, %v1116_v46  ;;  %v135_v62 = vmul.f32 %v1061_v14, %v1118_v47  ;;  %p951_p2 = scmp.ne.s32.totalorder %s828_s7, %s950_s8  ;;  %p956_p4 = scmp.lt.s32.totalorder %s950_s8, %s950_s8 }
  0x3c   :  { %v141_v59 = vadd.f32 %v133_v50, %v103_v45  ;;  %519 = vrot.lane.b32.xlu1 %v468_v42, %s983_s18  ;;  %v186_v6 = vmul.f32 %v1067_v17, %v1125_v51  ;;  %v104_v10 = vmul.f32 %v1059_v13, %v1129_v53  ;;  %v134_v11 = vmul.f32 %v1061_v14, %v1131_v54 }
  0x3d   :  { %v140_v63 = vadd.f32 %v132_v57, %v102_v52  ;;  %v199_v15 = vadd.f32 %v191_v49, %v145_v55  ;;  %v1156_v18 = vstv %s1089_s2  ;;  %v189_v23 = vmul.f32 %v1067_v17, %v1137_v60  ;;  %p957_p5 = por %p956_p4, %p955_p3 }
  0x3e   :  { %251 = vrot.lane.b32.xlu0 %v200_v48, %s983_s18  ;;  %v195_v22 = vadd.f32 %v187_v56, %v141_v59  ;;  %v121_v24 = vmul.f32 %v1156_v18, %v1033_v0  ;;  %v1165_v26 = vstv %s1099_s16  ;;  %v143_v27 = vadd.f32 %v135_v62, %v105_v61 }
  0x3f   :  { %v167_v28 = vmul.f32 %v1165_v26, %v1037_v2  ;;  %v1170_v29 = vstv %s1109_s17  ;;  %v106_v32 = vmul.f32 %v1059_v13, %v1150_v12  ;;  %v194_v33 = vadd.f32 %v186_v6, %v140_v63  ;;  %p958_p6 = pnand %p957_p5, %p951_p2 }
  0x40   :  { %517 = vrot.lane.b32.xlu1 %v467_v58, %s983_s18  ;;  %v142_v36 = vadd.f32 %v134_v11, %v104_v10  ;;  %v188_v37 = vmul.f32 %v1067_v17, %v1153_v16  ;;  %v136_v38 = vmul.f32 %v1061_v14, %v1158_v21  ;;  %v221_v13 = vmul.f32 %v1170_v29, %v1039_v3 }
  0x41   :  { %v175_v39 = vadd.f32 %v167_v28, %v121_v24  ;;  %v370_v42 = vmul.f32 %v1041_v4, %v1097_v35  ;;  %v400_v43 = vmul.f32 %v1047_v7, %v1107_v41  ;;  %v190_v14 = vmul.f32 %v1067_v17, %v1172_v31 }
  0x42   :  { %249 = vrot.lane.b32.xlu0 %v199_v15, %s983_s18  ;;  %v144_v44 = vadd.f32 %v136_v38, %v106_v32  ;;  %v128_v45 = vmul.f32 %v1156_v18, %v1035_v1  ;;  %v174_v48 = vmul.f32 %v1165_v26, %v1043_v5  ;;  %v454_v50 = vmul.f32 %v1049_v8, %v1125_v51 }
  0x43   :  { %v408_v49 = vadd.f32 %v400_v43, %v370_v42  ;;  %v372_v52 = vmul.f32 %v1041_v4, %v1129_v53  ;;  %v402_v55 = vmul.f32 %v1047_v7, %v1131_v54  ;;  %v197_v17 = vadd.f32 %v189_v23, %v143_v27 }
  0x44   :  { %241 = vrot.lane.b32.xlu1 %v195_v22, %s983_s18  ;;  %v182_v56 = vadd.f32 %v174_v48, %v128_v45  ;;  %v228_v57 = vmul.f32 %v1170_v29, %v1051_v9  ;;  %v196_v58 = vadd.f32 %v188_v37, %v142_v36  ;;  %v229_v59 = vadd.f32 %v221_v13, %v175_v39 }
  0x45   :  { %v371_v61 = vmul.f32 %v1041_v4, %v1087_v30  ;;  %v401_v62 = vmul.f32 %v1047_v7, %v1095_v34  ;;  %v198_v63 = vadd.f32 %v190_v14, %v144_v44  ;;  %v456_v6 = vmul.f32 %v1049_v8, %v1153_v16 }
  0x46   :  { %239 = vrot.lane.b32.xlu0 %v194_v33, %s983_s18  ;;  %v374_v10 = vmul.f32 %v1041_v4, %v1150_v12  ;;  %v404_v11 = vmul.f32 %v1047_v7, %v1158_v21  ;;  %v462_v15 = vadd.f32 %v454_v50, %v408_v49  ;;  %v410_v22 = vadd.f32 %v402_v55, %v372_v52 }
  0x47   :  { %v373_v23 = vmul.f32 %v1041_v4, %v1116_v46  ;;  %v403_v24 = vmul.f32 %v1047_v7, %v1118_v47  ;;  %v236_v27 = vadd.f32 %v228_v57, %v182_v56  ;;  %v455_v28 = vmul.f32 %v1049_v8, %v1105_v40 }
  0x48   :  { %245 = vrot.lane.b32.xlu1 %v197_v17, %s983_s18  ;;  %v1228_v32 = vstv %s1181_s19  ;;  %v1231_v33 = vstv %s1183_s20  ;;  %v409_v36 = vadd.f32 %v401_v62, %v371_v61  ;;  %v458_v37 = vmul.f32 %v1049_v8, %v1172_v31 }
  0x49   :  { %v396_v4 = vmul.f32 %v1228_v32, %v1035_v1  ;;  %v442_v7 = vmul.f32 %v1231_v33, %v1043_v5  ;;  %v412_v38 = vadd.f32 %v404_v11, %v374_v10  ;;  %v1241_v39 = vstv %s1198_s21 }
  0x4a   :  { %243 = vrot.lane.b32.xlu0 %v196_v58, %s983_s18  ;;  %v389_v13 = vmul.f32 %v1228_v32, %v1033_v0  ;;  %v435_v42 = vmul.f32 %v1231_v33, %v1037_v2  ;;  %v411_v43 = vadd.f32 %v403_v24, %v373_v23  ;;  %v457_v44 = vmul.f32 %v1049_v8, %v1137_v60 }
  0x4b   :  { %v450_v14 = vadd.f32 %v442_v7, %v396_v4  ;;  %v496_v45 = vmul.f32 %v1241_v39, %v1051_v9  ;;  %v489_v49 = vmul.f32 %v1241_v39, %v1039_v3  ;;  %v390_v50 = vmul.f32 %v1228_v32, %v1097_v35 }
  0x4c   :  { %286 = vrot.lane.b32.xlu1 %v229_v59, %s984_s22  ;;  %v443_v48 = vadd.f32 %v435_v42, %v389_v13  ;;  %v436_v52 = vmul.f32 %v1231_v33, %v1107_v41  ;;  %v464_v8 = vadd.f32 %v456_v6, %v410_v22  ;;  %v490_v55 = vmul.f32 %v1241_v39, %v1125_v51 }
  0x4d   :  { %v122_v17 = vmul.f32 %v1156_v18, %v1097_v35  ;;  %v168_v56 = vmul.f32 %v1165_v26, %v1107_v41  ;;  %v463_v57 = vadd.f32 %v455_v28, %v409_v36  ;;  %v124_v59 = vmul.f32 %v1156_v18, %v1129_v53 }
  0x4e   :  { %247 = vrot.lane.b32.xlu0 %v198_v63, %s983_s18  ;;  %v444_v58 = vadd.f32 %v436_v52, %v390_v50  ;;  %v170_v61 = vmul.f32 %v1165_v26, %v1131_v54  ;;  %v222_v63 = vmul.f32 %v1170_v29, %v1125_v51  ;;  %v123_v6 = vmul.f32 %v1156_v18, %v1087_v30 }
  0x4f   :  { %v176_v62 = vadd.f32 %v168_v56, %v122_v17  ;;  %v169_v10 = vmul.f32 %v1165_v26, %v1095_v34  ;;  %v466_v11 = vadd.f32 %v458_v37, %v412_v38  ;;  %v465_v22 = vadd.f32 %v457_v44, %v411_v43 }
  0x50   :  { %507 = vrot.lane.b32.xlu1 %v462_v15, %s983_s18  ;;  %v504_v23 = vadd.f32 %v496_v45, %v450_v14  ;;  %v497_v24 = vadd.f32 %v489_v49, %v443_v48  ;;  %v1277_v28 = vadd.f32 %v490_v55, %v444_v58  ;;  %v224_v36 = vmul.f32 %v1170_v29, %v1153_v16 }
  0x51   :  { %v126_v4 = vmul.f32 %v1156_v18, %v1150_v12  ;;  %v172_v7 = vmul.f32 %v1165_v26, %v1158_v21  ;;  %v178_v13 = vadd.f32 %v170_v61, %v124_v59  ;;  %v223_v15 = vmul.f32 %v1170_v29, %v1105_v40 }
  0x52   :  { %300 = vrot.lane.b32.xlu0 %v236_v27, %s984_s22  ;;  %v125_v37 = vmul.f32 %v1156_v18, %v1116_v46  ;;  %v171_v27 = vmul.f32 %v1165_v26, %v1118_v47  ;;  %v1291_v38 = vadd.f32 %v222_v63, %v176_v62  ;;  %v177_v42 = vadd.f32 %v169_v10, %v123_v6 }
  0x53   :  { %v391_v43 = vmul.f32 %v1228_v32, %v1087_v30  ;;  %v437_v44 = vmul.f32 %v1231_v33, %v1095_v34  ;;  %v226_v14 = vmul.f32 %v1170_v29, %v1172_v31  ;;  %v225_v45 = vmul.f32 %v1170_v29, %v1137_v60 }
  0x54   :  { %511 = vrot.lane.b32.xlu1 %v464_v8, %s983_s18  ;;  %v127_v48 = vmul.f32 %v1156_v18, %v1071_v19  ;;  %v173_v49 = vmul.f32 %v1165_v26, %v1073_v20  ;;  %v180_v50 = vadd.f32 %v172_v7, %v126_v4  ;;  %v179_v52 = vadd.f32 %v171_v27, %v125_v37 }
  0x55   :  { %v491_v8 = vmul.f32 %v1241_v39, %v1105_v40  ;;  %v393_v55 = vmul.f32 %v1228_v32, %v1116_v46  ;;  %v445_v18 = vadd.f32 %v437_v44, %v391_v43  ;;  %v227_v26 = vmul.f32 %v1170_v29, %v1081_v25 }
  0x56   :  { %509 = vrot.lane.b32.xlu0 %v463_v57, %s983_s18  ;;  %v181_v17 = vadd.f32 %v173_v49, %v127_v48  ;;  %v439_v56 = vmul.f32 %v1231_v33, %v1118_v47  ;;  %v232_v57 = vadd.f32 %v224_v36, %v178_v13  ;;  %v493_v58 = vmul.f32 %v1241_v39, %v1137_v60 }
  0x57   :  { %v392_v59 = vmul.f32 %v1228_v32, %v1129_v53  ;;  %v438_v61 = vmul.f32 %v1231_v33, %v1131_v54  ;;  %v231_v29 = vadd.f32 %v223_v15, %v177_v42  ;;  %v395_v63 = vmul.f32 %v1228_v32, %v1071_v19 }
  0x58   :  { %515 = vrot.lane.b32.xlu1 %v466_v11, %s983_s18  ;;  %v447_v62 = vadd.f32 %v439_v56, %v393_v55  ;;  %v441_v6 = vmul.f32 %v1231_v33, %v1073_v20  ;;  %v1339_v10 = vadd.f32 %v226_v14, %v180_v50  ;;  %v1341_v36 = vadd.f32 %v225_v45, %v179_v52 }
  0x59   :  { %v446_v4 = vadd.f32 %v438_v61, %v392_v59  ;;  %v492_v11 = vmul.f32 %v1241_v39, %v1153_v16  ;;  %v1345_v7 = vadd.f32 %v491_v8, %v445_v18  ;;  %v1347_v13 = vadd.f32 %v227_v26, %v181_v17 }
  0x5a   :  { %513 = vrot.lane.b32.xlu0 %v465_v22, %s983_s18  ;;  %v1351_v15 = vmul.f32 %v1241_v39, %v1081_v25  ;;  %v1355_v22 = vmul.f32 %v1228_v32, %v1150_v12  ;;  %v1357_v37 = vadd.f32 %v493_v58, %v447_v62  ;;  %v1359_v27 = vadd.f32 %v441_v6, %v395_v63 }
  0x5b   :  { %v1363_v42 = vmul.f32 %v1231_v33, %v1158_v21  ;;  %v1366_v43 = vstv %s1297_s23  ;;  %v1371_v44 = vmul.f32 %v1241_v39, %v1172_v31  ;;  %v1376_v14 = vstv %s1308_s24 }
  0x5c   :  { %551 = vrot.lane.b32.xlu1 %v504_v23, %s984_s22  ;;  %v379_v32 = vmul.f32 %v1366_v43, %v1033_v0  ;;  %v1379_v45 = vstv %s1310_s1  ;;  %v1382_v48 = vadd.f32 %v492_v11, %v446_v4  ;;  %v417_v33 = vmul.f32 %v1376_v14, %v1037_v2 }
  0x5d   :  { %v471_v23 = vmul.f32 %v1379_v45, %v1039_v3  ;;  %v110_v49 = vstv %s1317_s25  ;;  %v148_v50 = vstv %s1323_s26  ;;  %v202_v52 = vstv %s1325_s27 }
  0x5e   :  { %537 = vrot.lane.b32.xlu0 %v497_v24, %s984_s22  ;;  %v111_v39 = vmul.f32 %v110_v49, %v1033_v0  ;;  %v386_v8 = vmul.f32 %v1366_v43, %v1035_v1  ;;  %v425_v55 = vadd.f32 %v417_v33, %v379_v32  ;;  %v149_v18 = vmul.f32 %v148_v50, %v1037_v2 }
  0x5f   :  { %v203_v24 = vmul.f32 %v202_v52, %v1039_v3  ;;  %v424_v17 = vmul.f32 %v1376_v14, %v1043_v5  ;;  %v478_v26 = vmul.f32 %v1379_v45, %v1051_v9  ;;  %v118_v0 = vmul.f32 %v110_v49, %v1035_v1 }
  0x60   :  { %539 = vrot.lane.b32.xlu1 %v1277_v28, %s984_s22  ;;  %v156_v56 = vmul.f32 %v148_v50, %v1043_v5  ;;  %v210_v58 = vmul.f32 %v202_v52, %v1051_v9  ;;  %v1407_v2 = vadd.f32 %v471_v23, %v425_v55  ;;  %v157_v3 = vadd.f32 %v149_v18, %v111_v39 }
  0x61   :  { %v432_v59 = vadd.f32 %v424_v17, %v386_v8  ;;  %v112_v61 = vmul.f32 %v110_v49, %v1097_v35  ;;  %v113_v28 = vmul.f32 %v110_v49, %v1087_v30  ;;  %v150_v63 = vmul.f32 %v148_v50, %v1107_v41 }
  0x62   :  { %288 = vrot.lane.b32.xlu0 %v1291_v38, %s984_s22  ;;  %v164_v62 = vadd.f32 %v156_v56, %v118_v0  ;;  %v151_v1 = vmul.f32 %v148_v50, %v1095_v34  ;;  %v1413_v6 = vadd.f32 %v203_v24, %v157_v3  ;;  %v204_v9 = vmul.f32 %v202_v52, %v1125_v51 }
  0x63   :  { %v1415_v5 = vadd.f32 %v478_v26, %v432_v59  ;;  %v205_v38 = vmul.f32 %v202_v52, %v1105_v40  ;;  %v158_v11 = vadd.f32 %v150_v63, %v112_v61  ;;  %v114_v33 = vmul.f32 %v110_v49, %v1129_v53 }
  0x64   :  { %292 = vrot.lane.b32.xlu1 %v232_v57, %s984_s22  ;;  %v1420_v4 = vadd.f32 %v210_v58, %v164_v62  ;;  %v159_v32 = vadd.f32 %v151_v1, %v113_v28  ;;  %v115_v23 = vmul.f32 %v110_v49, %v1116_v46  ;;  %v152_v39 = vmul.f32 %v148_v50, %v1131_v54 }
  0x65   :  { %v153_v8 = vmul.f32 %v148_v50, %v1118_v47  ;;  %v206_v55 = vmul.f32 %v202_v52, %v1153_v16  ;;  %v1428_v18 = vadd.f32 %v204_v9, %v158_v11  ;;  %v207_v57 = vmul.f32 %v202_v52, %v1137_v60 }
  0x66   :  { %290 = vrot.lane.b32.xlu0 %v231_v29, %s984_s22  ;;  %v1430_v24 = vadd.f32 %v205_v38, %v159_v32  ;;  %v116_v17 = vmul.f32 %v110_v49, %v1150_v12  ;;  %v160_v26 = vadd.f32 %v152_v39, %v114_v33  ;;  %v117_v29 = vmul.f32 %v110_v49, %v1071_v19 }
  0x67   :  { %v161_v0 = vadd.f32 %v153_v8, %v115_v23  ;;  %v154_v56 = vmul.f32 %v148_v50, %v1158_v21  ;;  %v155_v58 = vmul.f32 %v148_v50, %v1073_v20  ;;  %v208_v3 = vmul.f32 %v202_v52, %v1172_v31 }
  0x68   :  { %296 = vrot.lane.b32.xlu1 %v1339_v10, %s984_s22  ;;  %v209_v59 = vmul.f32 %v202_v52, %v1081_v25  ;;  %v380_v61 = vmul.f32 %v1366_v43, %v1097_v35  ;;  %v1445_v62 = vadd.f32 %v206_v55, %v160_v26  ;;  %v418_v10 = vmul.f32 %v1376_v14, %v1107_v41 }
  0x69   :  { %v1447_v49 = vadd.f32 %v207_v57, %v161_v0  ;;  %v162_v28 = vadd.f32 %v154_v56, %v116_v17  ;;  %v448_v50 = vadd.f32 %v1363_v42, %v1355_v22  ;;  %v163_v63 = vadd.f32 %v155_v58, %v117_v29 }
  0x6a   :  { %294 = vrot.lane.b32.xlu0 %v1341_v36, %s984_s22  ;;  %v472_v52 = vmul.f32 %v1379_v45, %v1125_v51  ;;  %v381_v35 = vmul.f32 %v1366_v43, %v1087_v30  ;;  %v426_v36 = vadd.f32 %v418_v10, %v380_v61  ;;  %v382_v9 = vmul.f32 %v1366_v43, %v1129_v53 }
  0x6b   :  { %v1457_v1 = vadd.f32 %v208_v3, %v162_v28  ;;  %v419_v38 = vmul.f32 %v1376_v14, %v1095_v34  ;;  %v503_v41 = vadd.f32 %v1351_v15, %v1359_v27  ;;  %v1467_v22 = vadd.f32 %v209_v59, %v163_v63 }
  0x6c   :  { %541 = vrot.lane.b32.xlu1 %v1345_v7, %s984_s22  ;;  %v420_v30 = vmul.f32 %v1376_v14, %v1131_v54  ;;  %v473_v51 = vmul.f32 %v1379_v45, %v1105_v40  ;;  %v1475_v53 = vadd.f32 %v472_v52, %v426_v36  ;;  %v474_v7 = vmul.f32 %v1379_v45, %v1153_v16 }
  0x6d   :  { %v427_v34 = vadd.f32 %v419_v38, %v381_v35  ;;  %v385_v15 = vmul.f32 %v1366_v43, %v1071_v19  ;;  %v423_v42 = vmul.f32 %v1376_v14, %v1073_v20  ;;  %v477_v54 = vmul.f32 %v1379_v45, %v1081_v25 }
  0x6e   :  { %298 = vrot.lane.b32.xlu0 %v1347_v13, %s984_s22  ;;  %v428_v27 = vadd.f32 %v420_v30, %v382_v9  ;;  %v383_v40 = vmul.f32 %v1366_v43, %v1116_v46  ;;  %v384_v11 = vmul.f32 %v1366_v43, %v1150_v12  ;;  %v421_v16 = vmul.f32 %v1376_v14, %v1118_v47 }
  0x6f   :  { %v1487_v13 = vadd.f32 %v473_v51, %v427_v34  ;;  %v422_v19 = vmul.f32 %v1376_v14, %v1158_v21  ;;  %v431_v25 = vadd.f32 %v423_v42, %v385_v15  ;;  %v475_v46 = vmul.f32 %v1379_v45, %v1137_v60 }
  0x70   :  { %545 = vrot.lane.b32.xlu1 %v1357_v37, %s984_s22  ;;  %v1497_v20 = vadd.f32 %v474_v7, %v428_v27  ;;  %v476_v32 = vmul.f32 %v1379_v45, %v1172_v31  ;;  %v502_v47 = vadd.f32 %v1371_v44, %v448_v50  ;;  %v429_v12 = vadd.f32 %v421_v16, %v383_v40 }
  0x71   :  { %v430_v43 = vadd.f32 %v422_v19, %v384_v11  ;;  %v1506_v21 = vadd.f32 %v477_v54, %v431_v25  ;;  %v74_v60 = vlaneseq  ;;  %v1553_v7 = vstv %s601_s28 }
  0x72   :  { %543 = vrot.lane.b32.xlu0 %v1382_v48, %s984_s22  ;;  %v1508_v14 = vadd.f32 %v475_v46, %v429_v12  ;;  %v1557_v27 = vstv %s857_s30  ;;  %v1561_v42 = vstv %s859_s4  ;;  %v1569_v19 = vstv %s855_s5 }
  0x73   :  { %v1510_v37 = vadd.f32 %v476_v32, %v430_v43  ;;  %v1514_v33 = vand.u32 127, %v74_v60  ;;  %v1574_v12 = vstv %s858_s0 }
  0x74   :  { %549 = vrot.lane.b32.xlu1 %v503_v41, %s984_s22 }
  0x75   :  { %vm253_vm0 = vcmp.lt.s32.totalorder %v1514_v33, 1  ;;  %vm83_vm1 = vcmp.eq.s32.totalorder %v1514_v33, 0  ;;  %v1533_v28 = vadd.s32 896, %v1514_v33  ;;  %vm302_vm2 = vcmp.lt.s32.totalorder %v1514_v33, 127 }
  0x76   :  { %547 = vrot.lane.b32.xlu0 %v502_v47, %s984_s22 }
  0x77   :  { %vm98_vm3 = vcmp.eq.s32.totalorder %v1533_v28, 1023 }
  0xaa   :  { %v506_v31 = vpop.permute.xlu1 %505 }
  0xac   :  { %v238_v45 = vpop.permute.xlu0 %237 }
  0xae   :  { %v520_v44 = vpop.permute.xlu1 %519 }
  0xaf   :  { %v528_v48 = vsel %vm253_vm0, %v520_v44, %v506_v31 }
  0xb0   :  { %v252_v23 = vpop.permute.xlu0 %251  ;;  %v529_v39 = vsel %vm83_vm1, 0.0, %v528_v48 }
  0xb1   :  { %v261_v8 = vsel %vm253_vm0, %v252_v23, %v238_v45  ;;  %v1525_v55 = vadd.f32 %v529_v39, %v1407_v2 }
  0xb2   :  { %v278_v57 = vsel %vm83_vm1, 0.0, %v261_v8  ;;  %v518_v26 = vpop.permute.xlu1 %517 }
  0xb3   :  { %v1530_v17 = vadd.f32 %v278_v57, %v1413_v6  ;;  %v521_v30 = vsel %vm253_vm0, %v518_v26, %v520_v44 }
  0xb4   :  { %v250_v0 = vpop.permute.xlu0 %249  ;;  %v576_v25 = vadd.f32 %v521_v30, %v1415_v5 }
  0xb5   :  { %v254_v50 = vsel %vm253_vm0, %v250_v0, %v252_v23 }
  0xb6   :  { %v242_v29 = vpop.permute.xlu1 %241  ;;  %v342_v36 = vadd.f32 %v254_v50, %v1420_v4  ;;  %v1559_v4 = vstv %s856_s29 }
  0xb8   :  { %v240_v56 = vpop.permute.xlu0 %239 }
  0xb9   :  { %v259_v51 = vsel %vm253_vm0, %v240_v56, %v242_v29  ;;  %v260_v34 = vsel %vm253_vm0, %v238_v45, %v240_v56 }
  0xba   :  { %v246_v58 = vpop.permute.xlu1 %245  ;;  %v336_v46 = vadd.f32 %v260_v34, %v1428_v18  ;;  %v337_v32 = vadd.f32 %v259_v51, %v1430_v24 }
  0xbc   :  { %v244_v3 = vpop.permute.xlu0 %243 }
  0xbd   :  { %v258_v15 = vsel %vm253_vm0, %v242_v29, %v244_v3  ;;  %v257_v54 = vsel %vm253_vm0, %v244_v3, %v246_v58 }
  0xbe   :  { %v287_v59 = vpop.permute.xlu1 %286  ;;  %v338_v43 = vadd.f32 %v258_v15, %v1445_v62  ;;  %v339_v5 = vadd.f32 %v257_v54, %v1447_v49 }
  0xc0   :  { %v248_v61 = vpop.permute.xlu0 %247 }
  0xc1   :  { %v256_v40 = vsel %vm253_vm0, %v246_v58, %v248_v61  ;;  %v255_v60 = vsel %vm253_vm0, %v248_v61, %v250_v0 }
  0xc2   :  { %v508_v2 = vpop.permute.xlu1 %507  ;;  %v1586_v18 = vadd.f32 %v256_v40, %v1457_v1  ;;  %v1597_v49 = vadd.f32 %v255_v60, %v1467_v22 }
  0xc3   :  { %v527_v45 = vsel %vm253_vm0, %v506_v31, %v508_v2 }
  0xc4   :  { %v1536_v10 = vpop.permute.xlu0 %300  ;;  %v570_v1 = vadd.f32 %v527_v45, %v1475_v53 }
  0xc5   :  { %v310_v6 = vsel %vm302_vm2, %v1536_v10, %v287_v59 }
  0xc6   :  { %v512_v63 = vpop.permute.xlu1 %511  ;;  %v334_v52 = vsel %vm98_vm3, 0.0, %v310_v6 }
  0xc7   :  { %v350_v9 = vadd.f32 %v342_v36, %v334_v52 }
  0xc8   :  { %v510_v35 = vpop.permute.xlu0 %509 }
  0xc9   :  { %v358_v11 = vmul.f32 0.2, %v350_v9  ;;  %v525_v24 = vsel %vm253_vm0, %v510_v35, %v512_v63  ;;  %v526_v23 = vsel %vm253_vm0, %v508_v2, %v510_v35 }
  0xca   :  { %v516_v38 = vpop.permute.xlu1 %515  ;;  %v1610_v22 = vadd.f32 %v526_v23, %v1487_v13  ;;  %v1613_v53 = vadd.f32 %v525_v24, %v1497_v20 }
  0xcb   :  { %v366_v48 = vmax.f32 %v350_v9, %v358_v11  ;;  %v522_v31 = vsel %vm253_vm0, %v516_v38, %v518_v26 }
  0xcc   :  { %v514_v41 = vpop.permute.xlu0 %513  ;;  %v1616_v61 = vadd.f32 %v522_v31, %v1506_v21 }
  0xcd   :  { %v524_v57 = vsel %vm253_vm0, %v512_v63, %v514_v41  ;;  %v523_v56 = vsel %vm253_vm0, %v514_v41, %v516_v38  ;;  %v610_v52 = vmul.f32 %v1553_v7, %v366_v48  ;;  %v630_v20 = vmul.f32 %v1559_v4, %v366_v48 }
  0xce   :  { %v1567_v16 = vpop.permute.xlu1 %551  ;;  %v1620_v6 = vadd.f32 %v524_v57, %v1508_v14  ;;  %v620_v21 = vmul.f32 %v1569_v19, %v366_v48 }
  0xd0   :  { %v538_v47 = vpop.permute.xlu0 %537 }
  0xd1   :  { %v560_v44 = vsel %vm302_vm2, %v1567_v16, %v538_v47 }
  0xd2   :  { %v568_v62 = vsel %vm98_vm3, 0.0, %v560_v44  ;;  %v540_v8 = vpop.permute.xlu1 %539 }
  0xd3   :  { %v584_v39 = vadd.f32 %v576_v25, %v568_v62  ;;  %v559_v0 = vsel %vm302_vm2, %v538_v47, %v540_v8 }
  0xd4   :  { %v289_v29 = vpop.permute.xlu0 %288  ;;  %v577_v26 = vadd.f32 %v1525_v55, %v559_v0 }
  0xd5   :  { %v592_v58 = vmul.f32 0.2, %v584_v39  ;;  %v309_v3 = vsel %vm302_vm2, %v287_v59, %v289_v29  ;;  %v1624_v59 = vadd.f32 %v523_v56, %v1510_v37 }
  0xd6   :  { %v343_v2 = vadd.f32 %v1530_v17, %v309_v3  ;;  %v585_v63 = vmul.f32 0.2, %v577_v26  ;;  %v293_v55 = vpop.permute.xlu1 %292 }
  0xd7   :  { %v600_v50 = vmax.f32 %v584_v39, %v592_v58 }
  0xd8   :  { %v351_v13 = vmul.f32 0.2, %v343_v2  ;;  %v291_v35 = vpop.permute.xlu0 %290  ;;  %v593_v36 = vmax.f32 %v577_v26, %v585_v63 }
  0xd9   :  { %v307_v17 = vsel %vm302_vm2, %v291_v35, %v293_v55  ;;  %v308_v14 = vsel %vm302_vm2, %v289_v29, %v291_v35  ;;  %v640_v9 = vmul.f32 %v1557_v27, %v600_v50  ;;  %v676_v37 = vmul.f32 %v1561_v42, %v600_v50 }
  0xda   :  { %v359_v38 = vmax.f32 %v343_v2, %v351_v13  ;;  %v344_v41 = vadd.f32 %v336_v46, %v308_v14  ;;  %v345_v30 = vadd.f32 %v337_v32, %v307_v17  ;;  %v297_v51 = vpop.permute.xlu1 %296  ;;  %v633_v15 = vmul.f32 %v1557_v27, %v593_v36 }
  0xdb   :  { %v648_v34 = vadd.f32 %v640_v9, %v610_v52  ;;  %v669_v54 = vmul.f32 %v1561_v42, %v593_v36  ;;  %v658_v40 = vmul.f32 %v1574_v12, %v600_v50  ;;  %v1637_v60 = vadd.f32 %v676_v37, %v630_v20 }
  0xdc   :  { %v352_v11 = vmul.f32 0.2, %v344_v41  ;;  %v353_v25 = vmul.f32 0.2, %v345_v30  ;;  %v295_v47 = vpop.permute.xlu0 %294  ;;  %v603_v45 = vmul.f32 %v1553_v7, %v359_v38  ;;  %v623_v44 = vmul.f32 %v1559_v4, %v359_v38 }
  0xdd   :  { %v305_v46 = vsel %vm302_vm2, %v295_v47, %v297_v51  ;;  %v306_v32 = vsel %vm302_vm2, %v293_v55, %v295_v47  ;;  %699 = vrot.lane.b32.xlu1 %v648_v34, %s983_s18  ;;  %v1646_v24 = vadd.f32 %v658_v40, %v620_v21  ;;  %v1655_v29 = vmul.f32 %v1569_v19, %v359_v38 }
  0xde   :  { %v1648_v62 = vmax.f32 %v344_v41, %v352_v11  ;;  %v361_v48 = vmax.f32 %v345_v30, %v353_v25  ;;  %v346_v23 = vadd.f32 %v338_v43, %v306_v32  ;;  %v347_v31 = vadd.f32 %v339_v5, %v305_v46  ;;  %v542_v39 = vpop.permute.xlu1 %541 }
  0xdf   :  { %v1650_v57 = vadd.f32 %v633_v15, %v603_v45  ;;  %v1652_v0 = vadd.f32 %v669_v54, %v623_v44  ;;  %v1658_v56 = vmul.f32 %v1574_v12, %v593_v36  ;;  %v558_v3 = vsel %vm302_vm2, %v540_v8, %v542_v39 }
  0xe0   :  { %v354_v58 = vmul.f32 0.2, %v346_v23  ;;  %v355_v26 = vmul.f32 0.2, %v347_v31  ;;  %v299_v2 = vpop.permute.xlu0 %298  ;;  %v604_v43 = vmul.f32 %v1553_v7, %v1648_v62  ;;  %v578_v5 = vadd.f32 %v570_v1, %v558_v3 }
  0xe1   :  { %v303_v50 = vsel %vm302_vm2, %v299_v2, %v1536_v10  ;;  %v304_v63 = vsel %vm302_vm2, %v297_v51, %v299_v2  ;;  %v605_v55 = vmul.f32 %v1553_v7, %v361_v48  ;;  %v624_v1 = vmul.f32 %v1559_v4, %v1648_v62 }
  0xe2   :  { %v362_v52 = vmax.f32 %v346_v23, %v354_v58  ;;  %v1670_v13 = vmax.f32 %v347_v31, %v355_v26  ;;  %v348_v35 = vadd.f32 %v1586_v18, %v304_v63  ;;  %v349_v8 = vadd.f32 %v1597_v49, %v303_v50  ;;  %v546_v21 = vpop.permute.xlu1 %545 }
  0xe3   :  { %v586_v20 = vmul.f32 0.2, %v578_v5  ;;  %v625_v36 = vmul.f32 %v1559_v4, %v361_v48  ;;  %v1678_v10 = vmul.f32 %v1569_v19, %v361_v48 }
  0xe4   :  { %v356_v17 = vmul.f32 0.2, %v348_v35  ;;  %v357_v14 = vmul.f32 0.2, %v349_v8  ;;  %v544_v9 = vpop.permute.xlu0 %543  ;;  %v606_v38 = vmul.f32 %v1553_v7, %v362_v52  ;;  %v607_v18 = vmul.f32 %v1553_v7, %v1670_v13 }
  0xe5   :  { %v1683_v41 = vmax.f32 %v578_v5, %v586_v20  ;;  %v556_v49 = vsel %vm302_vm2, %v544_v9, %v546_v21  ;;  %v557_v30 = vsel %vm302_vm2, %v542_v39, %v544_v9  ;;  %v626_v37 = vmul.f32 %v1559_v4, %v362_v52 }
  0xe6   :  { %v1690_v51 = vmax.f32 %v348_v35, %v356_v17  ;;  %v1692_v34 = vmax.f32 %v349_v8, %v357_v14  ;;  %v579_v15 = vadd.f32 %v1610_v22, %v557_v30  ;;  %v580_v54 = vadd.f32 %v1613_v53, %v556_v49  ;;  %v550_v40 = vpop.permute.xlu1 %549 }
  0xe7   :  { %v634_v11 = vmul.f32 %v1557_v27, %v1683_v41  ;;  %v670_v25 = vmul.f32 %v1561_v42, %v1683_v41  ;;  %v627_v47 = vmul.f32 %v1559_v4, %v1670_v13  ;;  %v616_v45 = vmul.f32 %v1569_v19, %v362_v52 }
  0xe8   :  { %v587_v46 = vmul.f32 0.2, %v579_v15  ;;  %v588_v32 = vmul.f32 0.2, %v580_v54  ;;  %v553_v22 = vsel %vm302_vm2, %v550_v40, %v1567_v16  ;;  %v548_v44 = vpop.permute.xlu0 %547  ;;  %v608_v53 = vmul.f32 %v1553_v7, %v1690_v51 }
  0xe9   :  { %v583_v48 = vadd.f32 %v1616_v61, %v553_v22  ;;  %v554_v23 = vsel %vm302_vm2, %v548_v44, %v550_v40  ;;  %v555_v31 = vsel %vm302_vm2, %v546_v21, %v548_v44  ;;  %v642_v39 = vadd.f32 %v634_v11, %v604_v43 }
  0xea   :  { %v595_v58 = vmax.f32 %v579_v15, %v587_v46  ;;  %v596_v26 = vmax.f32 %v580_v54, %v588_v32  ;;  %v581_v3 = vadd.f32 %v1620_v6, %v555_v31  ;;  %v582_v2 = vadd.f32 %v1624_v59, %v554_v23 }
  0xeb   :  { %v591_v16 = vmul.f32 0.2, %v583_v48  ;;  %687 = vrot.lane.b32.xlu0 %v642_v39, %s983_s18  ;;  %v609_v5 = vmul.f32 %v1553_v7, %v1692_v34  ;;  %v678_v61 = vadd.f32 %v670_v25, %v624_v1  ;;  %v629_v50 = vmul.f32 %v1559_v4, %v1692_v34 }
  0xec   :  { %v589_v63 = vmul.f32 0.2, %v581_v3  ;;  %v590_v52 = vmul.f32 0.2, %v582_v2  ;;  %v635_v43 = vmul.f32 %v1557_v27, %v595_v58  ;;  %v636_v35 = vmul.f32 %v1557_v27, %v596_v26 }
  0xed   :  { %v599_v8 = vmax.f32 %v583_v48, %v591_v16  ;;  %v672_v6 = vmul.f32 %v1561_v42, %v596_v26  ;;  %v671_v59 = vmul.f32 %v1561_v42, %v595_v58  ;;  %v628_v20 = vmul.f32 %v1559_v4, %v1690_v51 }
  0xee   :  { %v597_v21 = vmax.f32 %v581_v3, %v589_v63  ;;  %v598_v7 = vmax.f32 %v582_v2, %v590_v52  ;;  %v643_v1 = vadd.f32 %v635_v43, %v605_v55  ;;  %v644_v17 = vadd.f32 %v636_v35, %v606_v38 }
  0xef   :  { %v639_v14 = vmul.f32 %v1557_v27, %v599_v8  ;;  %v680_v9 = vadd.f32 %v672_v6, %v626_v37  ;;  %v679_v49 = vadd.f32 %v671_v59, %v625_v36  ;;  %v675_v30 = vmul.f32 %v1561_v42, %v599_v8 }
  0xf0   :  { %689 = vrot.lane.b32.xlu1 %v643_v1, %s983_s18  ;;  %691 = vrot.lane.b32.xlu0 %v644_v17, %s983_s18  ;;  %v637_v15 = vmul.f32 %v1557_v27, %v597_v21  ;;  %v638_v54 = vmul.f32 %v1557_v27, %v598_v7  ;;  %v673_v4 = vmul.f32 %v1561_v42, %v597_v21 }
  0xf1   :  { %v647_v40 = vadd.f32 %v639_v14, %v609_v5  ;;  %v683_v11 = vadd.f32 %v675_v30, %v629_v50  ;;  %v674_v55 = vmul.f32 %v1561_v42, %v598_v7  ;;  %v653_v38 = vmul.f32 %v1574_v12, %v595_v58 }
  0xf2   :  { %v645_v37 = vadd.f32 %v637_v15, %v607_v18  ;;  %v646_v36 = vadd.f32 %v638_v54, %v608_v53  ;;  %v681_v25 = vadd.f32 %v673_v4, %v627_v47  ;;  %v654_v46 = vmul.f32 %v1574_v12, %v596_v26 }
  0xf3   :  { %v682_v32 = vadd.f32 %v674_v55, %v628_v20  ;;  %v661_v22 = vadd.f32 %v653_v38, %v1678_v10  ;;  %v617_v44 = vmul.f32 %v1569_v19, %v1670_v13  ;;  %v655_v27 = vmul.f32 %v1574_v12, %v597_v21 }
  0xf4   :  { %693 = vrot.lane.b32.xlu1 %v645_v37, %s983_s18  ;;  %695 = vrot.lane.b32.xlu0 %v646_v36, %s983_s18  ;;  %v662_v42 = vadd.f32 %v654_v46, %v616_v45  ;;  %v618_v18 = vmul.f32 %v1569_v19, %v1690_v51  ;;  %v656_v47 = vmul.f32 %v1574_v12, %v598_v7 }
  0xf5   :  { %v663_v53 = vadd.f32 %v655_v27, %v617_v44  ;;  %v619_v48 = vmul.f32 %v1569_v19, %v1692_v34  ;;  %v657_v10 = vmul.f32 %v1574_v12, %v599_v8  ;;  %v614_v13 = vmul.f32 %v1569_v19, %v1648_v62 }
  0xf6   :  { %v664_v23 = vadd.f32 %v656_v47, %v618_v18  ;;  %v652_v31 = vmul.f32 %v1574_v12, %v1683_v41  ;;  %v659_v45 = vadd.f32 %v1658_v56, %v1655_v29 }
  0xf7   :  { %v665_v39 = vadd.f32 %v657_v10, %v619_v48 }
  0xf8   :  { %697 = vrot.lane.b32.xlu1 %v647_v40, %s983_s18  ;;  %719 = vrot.lane.b32.xlu0 %v678_v61, %s984_s22  ;;  %v660_v51 = vadd.f32 %v652_v31, %v614_v13 }
  0xfc   :  { %731 = vrot.lane.b32.xlu1 %v1637_v60, %s984_s22  ;;  %723 = vrot.lane.b32.xlu0 %v680_v9, %s984_s22 }
 0x100   :  { %721 = vrot.lane.b32.xlu1 %v679_v49, %s984_s22  ;;  %685 = vrot.lane.b32.xlu0 %v1650_v57, %s983_s18 }
 0x104   :  { %725 = vrot.lane.b32.xlu1 %v681_v25, %s984_s22  ;;  %717 = vrot.lane.b32.xlu0 %v1652_v0, %s984_s22 }
 0x108   :  { %729 = vrot.lane.b32.xlu1 %v683_v11, %s984_s22  ;;  %727 = vrot.lane.b32.xlu0 %v682_v32, %s984_s22 }
 0x14f   :  { %v700_v12 = vpop.permute.xlu1 %699 }
 0x15d   :  { %v688_v19 = vpop.permute.xlu0 %687 }
 0x162   :  { %v690_v62 = vpop.permute.xlu1 %689  ;;  %v692_v60 = vpop.permute.xlu0 %691 }
 0x163   :  { %v706_v57 = vsel %vm253_vm0, %v688_v19, %v690_v62  ;;  %v705_v0 = vsel %vm253_vm0, %v690_v62, %v692_v60 }
 0x164   :  { %v751_v3 = vadd.f32 %v706_v57, %v661_v22  ;;  %v752_v8 = vadd.f32 %v705_v0, %v662_v42 }
 0x166   :  { %v694_v29 = vpop.permute.xlu1 %693  ;;  %v696_v56 = vpop.permute.xlu0 %695 }
 0x167   :  { %v704_v6 = vsel %vm253_vm0, %v692_v60, %v694_v29  ;;  %v703_v21 = vsel %vm253_vm0, %v694_v29, %v696_v56 }
 0x168   :  { %v753_v55 = vadd.f32 %v704_v6, %v663_v53  ;;  %v754_v36 = vadd.f32 %v703_v21, %v664_v23 }
 0x16a   :  { %v698_v41 = vpop.permute.xlu1 %697  ;;  %v720_v34 = vpop.permute.xlu0 %719 }
 0x16b   :  { %v701_v63 = vsel %vm253_vm0, %v698_v41, %v700_v12  ;;  %v702_v7 = vsel %vm253_vm0, %v696_v56, %v698_v41 }
 0x16c   :  { %v756_v49 = vadd.f32 %v701_v63, %v1646_v24  ;;  %v755_v24 = vadd.f32 %v702_v7, %v665_v39 }
 0x16e   :  { %v732_v58 = vpop.permute.xlu1 %731  ;;  %v724_v26 = vpop.permute.xlu0 %723 }
 0x172   :  { %v722_v2 = vpop.permute.xlu1 %721  ;;  %v686_v16 = vpop.permute.xlu0 %685 }
 0x173   :  { %v737_v5 = vsel %vm302_vm2, %v722_v2, %v724_v26  ;;  %v707_v61 = vsel %vm253_vm0, %v686_v16, %v688_v19  ;;  %v708_v50 = vsel %vm253_vm0, %v700_v12, %v686_v16  ;;  %v738_v59 = vsel %vm302_vm2, %v720_v34, %v722_v2 }
 0x174   :  { %v759_v52 = vadd.f32 %v751_v3, %v737_v5  ;;  %v709_v43 = vsel %vm83_vm1, 0.0, %v708_v50  ;;  %v750_v35 = vadd.f32 %v707_v61, %v660_v51 }
 0x175   :  { %v749_v20 = vadd.f32 %v709_v43, %v659_v45 }
 0x176   :  { %v862_v1 = vmul.f32 -1.442695, %v759_v52  ;;  %v758_v17 = vadd.f32 %v750_v35, %v738_v59  ;;  %v726_v14 = vpop.permute.xlu1 %725  ;;  %v718_v9 = vpop.permute.xlu0 %717 }
 0x177   :  { %v736_v30 = vsel %vm302_vm2, %v724_v26, %v726_v14  ;;  %v739_v15 = vsel %vm302_vm2, %v718_v9, %v720_v34  ;;  %v740_v54 = vsel %vm302_vm2, %v732_v58, %v718_v9 }
 0x178   :  { %874 = vpow2.f32 %v862_v1  ;;  %v861_v4 = vmul.f32 -1.442695, %v758_v17  ;;  %v760_v40 = vadd.f32 %v752_v8, %v736_v30  ;;  %v748_v11 = vsel %vm98_vm3, 0.0, %v740_v54 }
 0x179   :  { %v757_v38 = vadd.f32 %v749_v20, %v739_v15  ;;  %v764_v37 = vadd.f32 %v756_v49, %v748_v11 }
 0x17a   :  { %876 = vpow2.f32 %v861_v4  ;;  %v863_v25 = vmul.f32 -1.442695, %v760_v40  ;;  %v730_v46 = vpop.permute.xlu1 %729  ;;  %v728_v32 = vpop.permute.xlu0 %727 }
 0x17b   :  { %v860_v22 = vmul.f32 -1.442695, %v757_v38  ;;  %v867_v44 = vmul.f32 -1.442695, %v764_v37  ;;  %v733_v27 = vsel %vm302_vm2, %v730_v46, %v732_v58  ;;  %v734_v42 = vsel %vm302_vm2, %v728_v32, %v730_v46 }
 0x17c   :  { %878 = vpow2.f32 %v863_v25  ;;  %v763_v28 = vadd.f32 %v755_v24, %v733_v27  ;;  %v735_v18 = vsel %vm302_vm2, %v726_v14, %v728_v32  ;;  %v762_v47 = vadd.f32 %v754_v36, %v734_v42 }
 0x17d   :  { %880 = vpow2.f32 %v860_v22  ;;  %v761_v53 = vadd.f32 %v753_v55, %v735_v18 }
 0x17e   :  { %882 = vpow2.f32 %v867_v44  ;;  %v866_v48 = vmul.f32 -1.442695, %v763_v28  ;;  %v865_v10 = vmul.f32 -1.442695, %v762_v47 }
 0x17f   :  { %v864_v23 = vmul.f32 -1.442695, %v761_v53 }
 0x180   :  { %884 = vpow2.f32 %v866_v48 }
 0x181   :  { %886 = vpow2.f32 %v864_v23 }
 0x182   :  { %v875_v13 = vpop.eup %874  ;;  %888 = vpow2.f32 %v865_v10 }
 0x183   :  { %v791_v31 = vadd.f32 1.0, %v875_v13 }
 0x184   :  { %v877_v45 = vpop.eup %876 }
 0x185   :  { %890 = vrcp.f32 %v791_v31  ;;  %v790_v39 = vadd.f32 1.0, %v877_v45 }
 0x186   :  { %v879_v51 = vpop.eup %878 }
 0x187   :  { %v881_v19 = vpop.eup %880  ;;  %892 = vrcp.f32 %v790_v39  ;;  %v792_v33 = vadd.f32 1.0, %v879_v51 }
 0x188   :  { %v883_v12 = vpop.eup %882  ;;  %v789_v62 = vadd.f32 1.0, %v881_v19 }
 0x189   :  { %894 = vrcp.f32 %v792_v33  ;;  %v796_v60 = vadd.f32 1.0, %v883_v12 }
 0x18a   :  { %v885_v29 = vpop.eup %884  ;;  %896 = vrcp.f32 %v789_v62 }
 0x18b   :  { %v887_v56 = vpop.eup %886  ;;  %898 = vrcp.f32 %v796_v60  ;;  %v795_v41 = vadd.f32 1.0, %v885_v29 }
 0x18c   :  { %v889_v34 = vpop.eup %888  ;;  %v793_v58 = vadd.f32 1.0, %v887_v56 }
 0x18d   :  { %900 = vrcp.f32 %v795_v41  ;;  %v794_v26 = vadd.f32 1.0, %v889_v34 }
 0x18e   :  { %902 = vrcp.f32 %v793_v58 }
 0x18f   :  { %v891_v57 = vpop.eup %890  ;;  %904 = vrcp.f32 %v794_v26 }
 0x190   :  { %815 = vst [vmem:[#allocation9 + $0x10] sm:$0xff] %v891_v57 }
 0x191   :  { %v893_v3 = vpop.eup %892 }
 0x192   :  { %814 = vst [vmem:[#allocation9 + $0x8] sm:$0xff] %v893_v3 }
 0x193   :  { %v895_v0 = vpop.eup %894 }
 0x194   :  { %v897_v2 = vpop.eup %896  ;;  %816 = vst [vmem:[#allocation9 + $0x18] sm:$0xff] %v895_v0 }
 0x195   :  { %v899_v16 = vpop.eup %898  ;;  %813 = vst [vmem:[#allocation9] sm:$0xff] %v897_v2 }
 0x196   :  { %820 = vst [vmem:[#allocation9 + $0x38] sm:$0xff] %v899_v16 }
 0x197   :  { %v901_v5 = vpop.eup %900 }
 0x198   :  { %v903_v61 = vpop.eup %902  ;;  %819 = vst [vmem:[#allocation9 + $0x30] sm:$0xff] %v901_v5 }
 0x199   :  { %v905_v50 = vpop.eup %904  ;;  %817 = vst [vmem:[#allocation9 + $0x20] sm:$0xff] %v903_v61 }
 0x19a   :  { %818 = vst [vmem:[#allocation9 + $0x28] sm:$0xff] %v905_v50 }
 0x19b   :  { %961 = shalt.err (!%p958_p6)
}
 0x19c   :  { %s962_s11 = scalar_lea.hbm %s1819_s3, 1024 }
 0x19d   :  { %p963_p7 = scmp.ne.s32.totalorder %s1819_s3, %s962_s11  ;;  %p966_p8 = scmp.lt.u32.totalorder %s962_s11, %s1819_s3 }
 0x19f   :  { %p968_p9 = pnand %p966_p8, %p963_p7 }
 0x1a1   :  { %971 = shalt.err (!%p968_p9)
}
 0x1a2   :  { %830 = dma.vmem_to_hbm [thread:$0]  %s828_s7, 1024, %s1819_s3, [#allocation4]  }
 0x1a3   :  { %978 = dma.done.wait [#allocation4], 1024  }
 0x1a4   :  { %979 = vsyncadd [#allocation4], 4294966272 }
 0x1a5   :  { %834 = vsyncpa [#allocation3], 1 }
 0x1a6   :  { %835 = vsyncpa [#allocation4], 1 }
 0x1a7   :  { %836 = vsyncpa [#allocation5], 1 }
 0x1a8   :  { %837 = vsyncpa [#allocation6], 1 }

</bundles_post_ra>
